<compile_context>
chip_gen: v7x
topology: tpu7x:2x2x1
jax: 0.10.0
libtpu: 0.0.40
codegen_flags: <defaults>
</compile_context>

<pallas_src>
import jax
import jax.numpy as jnp
from jax.experimental import pallas as pl
from jax.experimental.pallas import tpu as pltpu


# Tile of the sequence dimension.  At TN=1024 the double-buffered VMEM footprint
# is ~4.8 MiB (x: 2x2 MiB, out: 2x256 KiB, W: ~256 KiB) -- comfortably inside the
# v5e 16 MiB scoped default and far under the v7x 64 MiB physical VMEM.
_TN_MAX = 1024


def _dr_kernel(w_ref, x_ref, o_ref):
    # w_ref: (64, 512)  -- resident weight W
    # x_ref: (1, 512, TN) -- native-layout input tile
    # o_ref: (1, 64, TN)  -- lane-dense output tile
    w = w_ref[...]                       # (64, 512)
    x = x_ref[0]                         # (512, TN)
    # MXU matmul in native orientation: y = W @ x  -> (64, TN)
    y = jnp.dot(w, x, preferred_element_type=jnp.float32)
    # L2-normalize over the feature dim (axis 0 here).
    ss = jnp.sum(y * y, axis=0, keepdims=True)          # (1, TN)
    inv = jax.lax.rsqrt(jnp.maximum(ss, 1e-20))          # == 1/clamp(sqrt(ss),1e-10)
    o_ref[0] = (y * inv).astype(o_ref.dtype)


def dimension_reductor(x, w):
    """x: [B, 512, N] float32 (native layout), w: [64, 512] semi-orthogonal.

    Returns [B, N, 64] float32, matching DimensionReductor.forward.
    """
    B, K, N = x.shape
    out_f, K2 = w.shape
    assert K == K2

    # Pick the sequence tile: either the full (possibly <128) extent, or a
    # 128-multiple tile with N padded up to a multiple of it.
    if N <= _TN_MAX:
        tn = N
        n_padded = N
    else:
        tn = _TN_MAX
        n_padded = pl.cdiv(N, tn) * tn

    x_in = x
    if n_padded != N:
        # Pad the ragged tail; padded columns are normalized independently and
        # sliced off below, so they never contaminate real outputs.
        x_in = jnp.pad(x, ((0, 0), (0, 0), (0, n_padded - N)))

    grid = (B, n_padded // tn)

    out = pl.pallas_call(
        _dr_kernel,
        out_shape=jax.ShapeDtypeStruct((B, out_f, n_padded), jnp.float32),
        grid_spec=pltpu.PrefetchScalarGridSpec(
            num_scalar_prefetch=0,
            grid=grid,
            in_specs=[
                # Weight: constant index_map -> DMA'd once, kept resident.
                pl.BlockSpec((out_f, K), lambda b, n: (0, 0)),
                # Input tile in native (B, 512, N) layout.
                pl.BlockSpec((1, K, tn), lambda b, n: (b, 0, n)),
            ],
            # Lane-dense output: last dim = tn (multiple of 128 or full extent).
            out_specs=pl.BlockSpec((1, out_f, tn), lambda b, n: (b, 0, n)),
        ),
        compiler_params=pltpu.CompilerParams(
            # Both axes fully independent -> megacore sharding on v7x.
            dimension_semantics=("parallel", "parallel"),
        ),
    )(w, x_in)

    if n_padded != N:
        out = out[:, :, :N]

    # Cheap transpose on the small (B, 64, N) output to match the PyTorch
    # forward's (B, N, 64) return layout.
    return jnp.swapaxes(out, -2, -1)


def make_orthogonal_weight(key, out_features=64, in_features=512):
    """Deterministic semi-orthogonal weight W (out, in) with W @ W^T = I."""
    raw = jax.random.normal(key, (in_features, out_features), dtype=jnp.float32)
    q, _ = jnp.linalg.qr(raw)             # (in, out), orthonormal columns
    return q.T                            # (out, in), orthonormal rows


if __name__ == "__main__":
    key = jax.random.PRNGKey(0)
    kx, kw = jax.random.split(key)

    B, K, N = 2, 512, 128                 # x: [batch, in_features=512, seq]
    x = jax.random.normal(kx, (B, K, N), dtype=jnp.float32)
    w = make_orthogonal_weight(kw, 64, K)

    out = dimension_reductor(x, w)
    out = jax.block_until_ready(out)

    # Pure-JAX reference check (mirrors the PyTorch forward exactly).
    ref = jnp.swapaxes(x, -2, -1) @ w.T
    ref = ref / jnp.maximum(
        jnp.linalg.norm(ref, axis=-1, keepdims=True), 1e-10
    )
    assert out.shape == (B, N, 64)
    assert jnp.allclose(out, ref, atol=1e-4, rtol=1e-4)

    print("KERNEL_OK")
</pallas_src>

<mosaic_0001>
module attributes {stable_mosaic.version = 11 : i64} {
  func.func @_dr_kernel(%arg0: i32, %arg1: i32, %arg2: memref<64x512xf32, #tpu.memory_space<vmem>>, %arg3: memref<1x512x128xf32, #tpu.memory_space<vmem>>, %arg4: memref<1x64x128xf32, #tpu.memory_space<vmem>>) attributes {dimension_semantics = [#tpu.dimension_semantics<parallel>, #tpu.dimension_semantics<parallel>], iteration_bounds = array<i64: 2, 1>, scalar_prefetch = 0 : i64, scratch_operands = 0 : i64, tpu.core_type = #tpu.core_type<tc>, window_params = [{pipeline_mode = #tpu.pipeline_mode<synchronous>, transform_indices = @transform_0, window_bounds = array<i64: 64, 512>}, {transform_indices = @transform_1, window_bounds = array<i64: 1, 512, 128>}, {transform_indices = @transform_2, window_bounds = array<i64: 1, 64, 128>}]} {
    %c0 = arith.constant 0 : index
    %c0_0 = arith.constant 0 : index
    %0 = vector.load %arg2[%c0, %c0_0] : memref<64x512xf32, #tpu.memory_space<vmem>>, vector<64x512xf32>
    %c0_1 = arith.constant 0 : index
    %c0_2 = arith.constant 0 : index
    %c0_3 = arith.constant 0 : index
    %1 = vector.load %arg3[%c0_1, %c0_2, %c0_3] : memref<1x512x128xf32, #tpu.memory_space<vmem>>, vector<1x512x128xf32>
    %2 = vector.shape_cast %1 : vector<1x512x128xf32> to vector<512x128xf32>
    %cst = arith.constant dense<0.000000e+00> : vector<64x128xf32>
    %3 = tpu.matmul %0, %2, %cst {dimension_numbers = #tpu.dot_dimension_numbers<[1], [0], [0], [1], [0, 0, 1, 1], [], []>} : vector<64x512xf32>, vector<512x128xf32>, vector<64x128xf32> -> vector<64x128xf32>
    %4 = arith.mulf %3, %3 : vector<64x128xf32>
    %cst_4 = arith.constant dense<0.000000e+00> : vector<128xf32>
    %5 = vector.multi_reduction <add>, %4, %cst_4 [0] : vector<64x128xf32> to vector<128xf32>
    %6 = vector.shape_cast %5 : vector<128xf32> to vector<1x128xf32>
    %cst_5 = arith.constant 9.99999968E-21 : f32
    %7 = vector.broadcast %cst_5 : f32 to vector<1x128xf32>
    %8 = arith.maximumf %6, %7 : vector<1x128xf32>
    %9 = math.rsqrt %8 : vector<1x128xf32>
    %10 = vector.broadcast %9 : vector<1x128xf32> to vector<64x128xf32>
    %11 = arith.mulf %3, %10 : vector<64x128xf32>
    %c0_6 = arith.constant 0 : index
    %c0_7 = arith.constant 0 : index
    %c0_8 = arith.constant 0 : index
    %12 = vector.load %arg4[%c0_6, %c0_7, %c0_8] : memref<1x64x128xf32, #tpu.memory_space<vmem>>, vector<1x64x128xf32>
    %13 = vector.shape_cast %12 : vector<1x64x128xf32> to vector<64x128xf32>
    %14 = vector.shape_cast %11 : vector<64x128xf32> to vector<1x64x128xf32>
    tpu.vector_store %arg4[%c0_6, %c0_7, %c0_8], %14 {strides = array<i32>} : memref<1x64x128xf32, #tpu.memory_space<vmem>>, vector<1x64x128xf32>,
    return
  }
  func.func @transform_0(%arg0: i32, %arg1: i32) -> (i32, i32) {
    %c0_i32 = arith.constant 0 : i32
    %c0_i32_0 = arith.constant 0 : i32
    %c0_i32_1 = arith.constant 0 : i32
    return %c0_i32, %c0_i32_0 : i32, i32
  }
  func.func @transform_1(%arg0: i32, %arg1: i32) -> (i32, i32, i32) {
    %c0_i32 = arith.constant 0 : i32
    %c0_i32_0 = arith.constant 0 : i32
    return %arg0, %c0_i32, %arg1 : i32, i32, i32
  }
  func.func @transform_2(%arg0: i32, %arg1: i32) -> (i32, i32, i32) {
    %c0_i32 = arith.constant 0 : i32
    %c0_i32_0 = arith.constant 0 : i32
    return %arg0, %c0_i32, %arg1 : i32, i32, i32
  }
}

</mosaic_0001>

<bundles_post_ra>
// kernel: tpu_custom_call.1
= control target key start
LH: loop header
LB: loop body
LE: loop exit
PB: predicated region body
PF: predicated region fallthrough
CT: control target
= control target key end

     0   :  { %7 = vsyncpa [#allocation3], 0  ;;  %s1398_s0 = inlined_call_operand.hbm [shape: f32[64,512], index: 0, kind: input, shape index: {}]   ;;  %s1399_s1 = inlined_call_operand.hbm [shape: f32[2,512,128], index: 1, kind: input, shape index: {}]   ;;  %s1400_s2 = inlined_call_operand.hbm [shape: f32[2,64,128], index: 2, kind: output, shape index: {}]  }
   0x1   :  { %8 = vsyncpa [#allocation6], 0 }
   0x2   :  { %10 = vsyncpa [#allocation6 + $0x1], 0 }
   0x3   :  { %11 = vsyncpa [#allocation4], 0 }
   0x4   :  { %13 = vsyncpa [#allocation4 + $0x1], 0  ;;  %s1097_s9 = smov 0   ;;  %s1099_s10 = smov 0  }
   0x5   :  { %s1101_s11 = smov 0   ;;  %s1103_s12 = smov 0  }
   0x6   :  { %s1105_s13 = smov 0   ;;  %s1107_s14 = smov 0  }
   0x7 LB: > { %s651_s15 = sadd.s32 4294967295, %s1071_s14   ;;  %s652_s16 = sadd.s32 4294967294, %s1071_s14   ;;  %s1071_s14 = sphi %s1107_s14, %s19_s14   ;;  %s1067_s13 = sphi %s1105_s13, %s1424_s13   ;;  %s1063_s12 = sphi %s1103_s12, %s1423_s12   ;;  %s1059_s11 = sphi %s1101_s11, %s1422_s11   ;;  %s1055_s10 = sphi %s1099_s10, %s1421_s10   ;;  %s1051_s9 = sphi %s1097_s9, %s1420_s9  }
   0x8   : > { %p74_p0 = scmp.ne.s32.totalorder %s1055_s10, %s1051_s9  ;;  %p1131_p1 = scmp.eq.s32.totalorder %s651_s15, 0 }
   0x9   : > { %p1135_p2 = scmp.eq.s32.totalorder %s651_s15, 1  ;;  %p106_p3 = scmp.eq.s32.totalorder %s652_s16, 1 }
   0xa   : > { %s1405_s17 = scalar_select %p1131_p1, 1, 0 }
   0xb   : > { %s1406_s18 = scalar_select %p1135_p2, 1, 0 }
   0xc   : > { %p1141_p4 = por %p1131_p1, %p74_p0  ;;  %p653_p5 = scmp.ge.s32.totalorder %s1071_s14, 1 }
   0xd   : > { %p1146_p6 = por %p106_p3, %p74_p0  ;;  %p113_p7 = scmp.lt.s32.totalorder %s1071_s14, 3 }
   0xe   : > { %s1407_s19 = scalar_select %p1141_p4, 1, 0 }
   0xf   : > { %s1408_s20 = scalar_select %p1146_p6, 1, 0 }
  0x10   : > { %p1151_p8 = pnand %p653_p5, %p113_p7  ;;  %s1073_s22 = smov [#allocation2]  }
  0x11   : > { %s125_s23 = sshll.u32 %s1073_s22, 4  ;;  %s31_s25 = sadd.s32 1, %s1067_s13  ;;  %s126_s23 = int_to_ptr.vmem [resolvable:$true] %s125_s23 }
  0x12   : > { %s1409_s21 = scalar_select %p1151_p8, 1, 0 }
  0x13   : > { %p854_p9 = pneg %p1151_p8  ;;  %s927_s28 = scalar_lea.hbm %s1398_s0, 4096 }
  0x14   : > { %p928_p12 = scmp.ne.s32.totalorder %s1398_s0, %s927_s28  ;;  %p934_p5 = scmp.lt.u32.totalorder %s927_s28, %s1398_s0 }
  0x15   : > { %p1160_p11 = pnand %p854_p9, %p1131_p1 }
  0x17   : > { %p929_p13 = pneg %p1160_p11 }
  0x19   : > { %p930_p0 = pnand %p929_p13, %p928_p12 }
  0x1b   : > { %p931_p3 = pneg %p930_p0 }
  0x1d   : > { %p936_p7 = pnand %p934_p5, %p931_p3 }
  0x1f   : > { %939 = shalt.err (!%p936_p7)
}
  0x20   : > { %s940_s5 = scalar_lea.vmem %s126_s23, 4096  ;;  %p948_p4 = scmp.lt.s32.totalorder %s126_s23, %s126_s23 }
  0x21   : > { %p941_p9 = scmp.ne.s32.totalorder %s126_s23, %s940_s5  ;;  %p949_p1 = scmp.lt.s32.totalorder %s940_s5, %s940_s5 }
  0x23   : > { %p943_p10 = pnand %p941_p9, %p929_p13  ;;  %p950_p8 = por %p949_p1, %p948_p4 }
  0x25   : > { %p944_p6 = pneg %p943_p10 }
  0x27   : > { %p951_p2 = pnand %p950_p8, %p944_p6 }
  0x29   : > { %954 = shalt.err (!%p951_p2)
}
  0x2a   : > { %s1074_s6 = smov 512   ;;  %s1075_s7 = smov 32  }
  0x2b   : > { %857 = dma.hbm_to_vmem [thread:$0]  (!%p1160_p11), %s1398_s0, 4096, %s126_s23, [#allocation3], %s1074_s6, %s1074_s6, %s1075_s7  }
  0x2c   : > { %p33_p1 = scmp.ge.s32.totalorder %s31_s25, 2  ;;  %s61_s16 = sadd.s32 1, %s1059_s11 }
  0x2d   : > { %p68_p2 = scmp.ne.s32.totalorder %s1059_s11, %s1055_s10  ;;  %p69_p4 = scmp.eq.s32.totalorder %s1071_s14, 0 }
  0x2e   : > { %s1426_s25 = smov (%p33_p1, %s31_s25), 0  ;;  %p1412_p8 = scmp.ne.s32.totalorder %s1406_s18, 0 }
  0x2f   : > { %p1187_p6 = por %p69_p4, %p68_p2  ;;  %s56_s24 = ssub.s32 %s1067_s13, %s1426_s25 }
  0x30   : > { %p1193_p10 = por %p1412_p8, %p68_p2  ;;  %p867_p12 = scmp.lt.s32.totalorder %s1071_s14, 2 }
  0x31   : > { %p59_p11 = scmp.eq.s32.totalorder %s56_s24, 0  ;;  %s139_s23 = sand.u32 1, %s1059_s11  }
  0x32   : > { %s656_s27 = sshll.u32 %s139_s23, 9  ;;  %s668_s29 = sshll.u32 %s1067_s13, 13 }
  0x33   : > { %s1202_s28 = scalar_select %p59_p11, %s1059_s11, %s61_s16  }
  0x34   : > { %s1208_s4 = scalar_lea.hbm %s1399_s1, %s668_s29  ;;  %s143_s18 = scalar_lea.vmem [#allocation5], %s656_s27 }
  0x35   : > { %s151_s5 = sshll.u32 %s143_s18, 4  ;;  %p1214_p13 = pnand %p867_p12, %p1187_p6  ;;  %s1210_s5 = int_to_ptr.vmem [resolvable:$true] %s151_s5 }
  0x36   : > { %s1218_s7 = scalar_lea.sflag [#allocation6], %s139_s23  ;;  %s955_s8 = scalar_lea.hbm %s1208_s4, 8192 }
  0x37   : > { %p956_p0 = scmp.ne.s32.totalorder %s1208_s4, %s955_s8  ;;  %p957_p3 = pneg %p1214_p13 }
  0x38   : > { %s960_s22 = scalar_lea.hbm %s1399_s1, 16384  ;;  %p961_p9 = scmp.lt.u32.totalorder %s1208_s4, %s1399_s1 }
  0x39   : > { %p958_p5 = pnand %p957_p3, %p956_p0  ;;  %p962_p1 = scmp.lt.u32.totalorder %s960_s22, %s955_s8 }
  0x3a   : > { %p964_p4 = scmp.lt.u32.totalorder %s955_s8, %s1208_s4 }
  0x3b   : > { %p959_p7 = pneg %p958_p5  ;;  %p963_p2 = por %p962_p1, %p961_p9 }
  0x3d   : > { %p965_p6 = por %p964_p4, %p963_p2 }
  0x3f   : > { %p966_p8 = pnand %p965_p6, %p959_p7 }
  0x41   : > { %969 = shalt.err (!%p966_p8)
}
  0x42   : > { %s970_s23 = scalar_lea.vmem %s1210_s5, 8192  ;;  %s1076_s29 = smov [#allocation5]  }
  0x43   : > { %p971_p12 = scmp.ne.s32.totalorder %s1210_s5, %s970_s23  ;;  %s975_s30 = sshll.u32 %s1076_s29, 4  ;;  %s976_s30 = int_to_ptr.vmem [resolvable:$false] %s975_s30 }
  0x44   : > { %s977_s3 = scalar_lea.vmem %s976_s30, 16384  ;;  %p978_p5 = scmp.lt.s32.totalorder %s1210_s5, %s976_s30 }
  0x45   : > { %p973_p11 = pnand %p971_p12, %p957_p3  ;;  %p979_p9 = scmp.lt.s32.totalorder %s977_s3, %s970_s23 }
  0x47   : > { %p974_p0 = pneg %p973_p11  ;;  %p980_p1 = por %p979_p9, %p978_p5 }
  0x49   : > { %p981_p2 = pnand %p980_p1, %p974_p0 }
  0x4b   : > { %984 = shalt.err (!%p981_p2)
}
  0x4c   : > { %s1077_s18 = smov 128   ;;  %s1078_s8 = smov 8  }
  0x4d   : > { %861 = dma.hbm_to_vmem [thread:$0]  (!%p1214_p13), %s1208_s4, 8192, %s1210_s5, %s1218_s7, %s1077_s18, %s1077_s18, %s1078_s8  }
  0x4e   : > { %p1415_p3 = scmp.ne.s32.totalorder %s1409_s21, 0 }
  0x4f   : > { %p1416_p7 = scmp.ne.s32.totalorder (!%p1415_p3), %s1405_s17, 0 }
  0x50   : > { %163 = sbr.rel (%p1415_p3) target bundleno = 423 (0x1a7), region = 28 }
  0x57   : > { %1038 = dma.done.wait (%p1416_p7), [#allocation3], 4096  }
  0x58   : > { %1040 = vsyncadd (%p1416_p7), [#allocation3], 4294963200  ;;  %s1253_s15 = sand.u32 1, %s1055_s10   ;;  %p1417_p13 = scmp.ne.s32.totalorder %s1407_s19, 0 }
  0x59   : > { %s661_s16 = sshll.u32 %s1253_s15, 9  ;;  %s170_s22 = scalar_lea.sflag [#allocation6], %s1253_s15 }
  0x5a   : > { %s1257_s24 = scalar_lea.vmem [#allocation5], %s661_s16 }
  0x5b   : > { %1042 = dma.done.wait (%p1417_p13), %s170_s22, 8192  }
  0x5c   : > { %1044 = vsyncadd (%p1417_p13), %s170_s22, 4294959104  ;;  %v242_v0 = vld [vmem:[%s1257_s24 + $0x80] sm:$0xff]  ;;  %v243_v1 = vld [vmem:[%s1257_s24 + $0x88] sm:$0xff]  ;;  %s662_s17 = sshll.u32 %s1253_s15, 6  ;;  %s669_s19 = sshll.u32 %s1063_s12, 10 }
  0x5d   : > { %v274_v2 = vld [vmem:[%s1257_s24 + $0x180] sm:$0xff]  ;;  %v782_v3 = vpack.c.bf16 %v243_v1, %v242_v0  ;;  %v275_v4 = vld [vmem:[%s1257_s24 + $0x188] sm:$0xff]  ;;  %v244_v11 = vld [vmem:[%s1257_s24 + $0x90] sm:$0xff]  ;;  %s193_s21 = scalar_lea.vmem [#allocation7], %s662_s17  ;;  %s1347_s7 = scalar_lea.hbm %s1400_s2, %s669_s19 }
  0x5e   : > { %v226_v5 = vld [vmem:[%s1257_s24] sm:$0xff]  ;;  %v227_v6 = vld [vmem:[%s1257_s24 + $0x8] sm:$0xff]  ;;  %v814_v7 = vpack.c.bf16 %v275_v4, %v274_v2  ;;  %v245_v13 = vld [vmem:[%s1257_s24 + $0x98] sm:$0xff]  ;;  %s554_s4 = sshll.u32 %s193_s21, 4  ;;  %s540_s12 = scalar_lea.sflag [#allocation4], %s1253_s15  ;;  %s1349_s4 = int_to_ptr.vmem [resolvable:$true] %s554_s4 }
  0x5f   : > { %v784_v8 = vpack.c.bf16 %v227_v6, %v226_v5  ;;  %v258_v9 = vld [vmem:[%s1257_s24 + $0x100] sm:$0xff]  ;;  %v259_v10 = vld [vmem:[%s1257_s24 + $0x108] sm:$0xff]  ;;  %783 = vmatprep.subr.bf16.mxu0 %v782_v3  ;;  %v276_v14 = vld [vmem:[%s1257_s24 + $0x190] sm:$0xff]  ;;  %v786_v16 = vpack.c.bf16 %v245_v13, %v244_v11  ;;  %s985_s27 = scalar_lea.vmem %s1349_s4, 1024  ;;  %s1079_s23 = smov [#allocation7]  }
  0x60   : > { %v816_v12 = vpack.c.bf16 %v259_v10, %v258_v9  ;;  %v277_v15 = vld [vmem:[%s1257_s24 + $0x198] sm:$0xff]  ;;  %815 = vmatprep.subr.bf16.mxu1 %v814_v7  ;;  %v228_v18 = vld [vmem:[%s1257_s24 + $0x10] sm:$0xff]  ;;  %v246_v23 = vld [vmem:[%s1257_s24 + $0xa0] sm:$0xff]  ;;  %p986_p4 = scmp.ne.s32.totalorder %s1349_s4, %s985_s27  ;;  %s989_s29 = sshll.u32 %s1079_s23, 4  ;;  %s990_s29 = int_to_ptr.vmem [resolvable:$false] %s989_s29 }
  0x61   : > { %785 = vmatpush3.bf16.msra.mxu0 %v784_v8  ;;  %v818_v17 = vpack.c.bf16 %v277_v15, %v276_v14  ;;  %v229_v19 = vld [vmem:[%s1257_s24 + $0x18] sm:$0xff]  ;;  %v260_v20 = vld [vmem:[%s1257_s24 + $0x110] sm:$0xff]  ;;  %v247_v24 = vld [vmem:[%s1257_s24 + $0xa8] sm:$0xff]  ;;  %s991_s30 = scalar_lea.vmem %s990_s29, 2048  ;;  %p992_p12 = scmp.lt.s32.totalorder %s1349_s4, %s990_s29 }
  0x62   : > { %817 = vmatpush3.bf16.msra.mxu1 %v816_v12  ;;  %v788_v21 = vpack.c.bf16 %v229_v19, %v228_v18  ;;  %v261_v22 = vld [vmem:[%s1257_s24 + $0x118] sm:$0xff]  ;;  %787 = vmatprep.subr.bf16.mxu0 %v786_v16  ;;  %v790_v26 = vpack.c.bf16 %v247_v24, %v246_v23  ;;  %v278_v27 = vld [vmem:[%s1257_s24 + $0x1a0] sm:$0xff]  ;;  %v279_v28 = vld [vmem:[%s1257_s24 + $0x1a8] sm:$0xff]  ;;  %p987_p6 = pnand %p986_p4, %p1193_p10  ;;  %p993_p11 = scmp.lt.s32.totalorder %s991_s30, %s985_s27 }
  0x63   : > { %819 = vmatprep.subr.bf16.mxu1 %v818_v17  ;;  %v820_v25 = vpack.c.bf16 %v261_v22, %v260_v20  ;;  %v230_v29 = vld [vmem:[%s1257_s24 + $0x20] sm:$0xff]  ;;  %v822_v30 = vpack.c.bf16 %v279_v28, %v278_v27  ;;  %v231_v31 = vld [vmem:[%s1257_s24 + $0x28] sm:$0xff]  ;;  %v248_v35 = vld [vmem:[%s1257_s24 + $0xb0] sm:$0xff] }
  0x64   : > { %v262_v32 = vld [vmem:[%s1257_s24 + $0x120] sm:$0xff]  ;;  %v263_v33 = vld [vmem:[%s1257_s24 + $0x128] sm:$0xff]  ;;  %v792_v34 = vpack.c.bf16 %v231_v31, %v230_v29  ;;  %v249_v36 = vld [vmem:[%s1257_s24 + $0xb8] sm:$0xff]  ;;  %p988_p8 = pneg %p987_p6  ;;  %p994_p0 = por %p993_p11, %p992_p12 }
  0x65   : > { %789 = vmatpush3.bf16.msra.mxu0 %v788_v21  ;;  %v280_v37 = vld [vmem:[%s1257_s24 + $0x1b0] sm:$0xff]  ;;  %v824_v38 = vpack.c.bf16 %v263_v33, %v262_v32  ;;  %v794_v39 = vpack.c.bf16 %v249_v36, %v248_v35  ;;  %v281_v40 = vld [vmem:[%s1257_s24 + $0x1b8] sm:$0xff]  ;;  %v250_v46 = vld [vmem:[%s1257_s24 + $0xc0] sm:$0xff] }
  0x66   : > { %821 = vmatpush3.bf16.msra.mxu1 %v820_v25  ;;  %791 = vmatprep.subr.bf16.mxu0 %v790_v26  ;;  %v232_v41 = vld [vmem:[%s1257_s24 + $0x30] sm:$0xff]  ;;  %v233_v42 = vld [vmem:[%s1257_s24 + $0x38] sm:$0xff]  ;;  %v826_v43 = vpack.c.bf16 %v281_v40, %v280_v37  ;;  %v251_v47 = vld [vmem:[%s1257_s24 + $0xc8] sm:$0xff]  ;;  %p995_p5 = pnand %p994_p0, %p988_p8 }
  0x67   : > { %823 = vmatprep.subr.bf16.mxu1 %v822_v30  ;;  %v264_v44 = vld [vmem:[%s1257_s24 + $0x130] sm:$0xff]  ;;  %v265_v45 = vld [vmem:[%s1257_s24 + $0x138] sm:$0xff]  ;;  %v282_v48 = vld [vmem:[%s1257_s24 + $0x1c0] sm:$0xff]  ;;  %v796_v50 = vpack.c.bf16 %v233_v42, %v232_v41  ;;  %v798_v52 = vpack.c.bf16 %v251_v47, %v250_v46 }
  0x68   : > { %v283_v49 = vld [vmem:[%s1257_s24 + $0x1c8] sm:$0xff]  ;;  %v828_v51 = vpack.c.bf16 %v265_v45, %v264_v44  ;;  %v234_v53 = vld [vmem:[%s1257_s24 + $0x40] sm:$0xff]  ;;  %v252_v58 = vld [vmem:[%s1257_s24 + $0xd0] sm:$0xff] }
  0x69   : > { %793 = vmatpush3.bf16.msra.mxu0 %v792_v34  ;;  %v235_v54 = vld [vmem:[%s1257_s24 + $0x48] sm:$0xff]  ;;  %v266_v55 = vld [vmem:[%s1257_s24 + $0x140] sm:$0xff]  ;;  %v830_v56 = vpack.c.bf16 %v283_v49, %v282_v48  ;;  %v253_v59 = vld [vmem:[%s1257_s24 + $0xd8] sm:$0xff] }
  0x6a   : > { %825 = vmatpush3.bf16.msra.mxu1 %v824_v38  ;;  %795 = vmatprep.subr.bf16.mxu0 %v794_v39  ;;  %v267_v57 = vld [vmem:[%s1257_s24 + $0x148] sm:$0xff]  ;;  %v284_v60 = vld [vmem:[%s1257_s24 + $0x1d0] sm:$0xff]  ;;  %v285_v61 = vld [vmem:[%s1257_s24 + $0x1d8] sm:$0xff]  ;;  %v800_v62 = vpack.c.bf16 %v235_v54, %v234_v53  ;;  %v802_v0 = vpack.c.bf16 %v253_v59, %v252_v58 }
  0x6b   : > { %827 = vmatprep.subr.bf16.mxu1 %v826_v43  ;;  %v832_v63 = vpack.c.bf16 %v267_v57, %v266_v55  ;;  %v236_v1 = vld [vmem:[%s1257_s24 + $0x50] sm:$0xff]  ;;  %v237_v2 = vld [vmem:[%s1257_s24 + $0x58] sm:$0xff]  ;;  %v834_v4 = vpack.c.bf16 %v285_v61, %v284_v60  ;;  %v254_v6 = vld [vmem:[%s1257_s24 + $0xe0] sm:$0xff] }
  0x6c   : > { %v268_v3 = vld [vmem:[%s1257_s24 + $0x150] sm:$0xff]  ;;  %v269_v5 = vld [vmem:[%s1257_s24 + $0x158] sm:$0xff]  ;;  %v255_v7 = vld [vmem:[%s1257_s24 + $0xe8] sm:$0xff]  ;;  %v804_v10 = vpack.c.bf16 %v237_v2, %v236_v1 }
  0x6d   : > { %797 = vmatpush3.bf16.msra.mxu0 %v796_v50  ;;  %v286_v8 = vld [vmem:[%s1257_s24 + $0x1e0] sm:$0xff]  ;;  %v287_v9 = vld [vmem:[%s1257_s24 + $0x1e8] sm:$0xff]  ;;  %v836_v13 = vpack.c.bf16 %v269_v5, %v268_v3  ;;  %v806_v14 = vpack.c.bf16 %v255_v7, %v254_v6  ;;  %v197_v17 = vld [vmem:[#allocation2 + $0x18] sm:$0xff] }
  0x6e   : > { %829 = vmatpush3.bf16.msra.mxu1 %v828_v51  ;;  %799 = vmatprep.subr.bf16.mxu0 %v798_v52  ;;  %v238_v11 = vld [vmem:[%s1257_s24 + $0x60] sm:$0xff]  ;;  %v239_v12 = vld [vmem:[%s1257_s24 + $0x68] sm:$0xff]  ;;  %v838_v18 = vpack.c.bf16 %v287_v9, %v286_v8  ;;  %v256_v20 = vld [vmem:[%s1257_s24 + $0xf0] sm:$0xff] }
  0x6f   : > { %831 = vmatprep.subr.bf16.mxu1 %v830_v56  ;;  %v270_v15 = vld [vmem:[%s1257_s24 + $0x160] sm:$0xff]  ;;  %v195_v16 = vld [vmem:[#allocation2 + $0x8] sm:$0xff]  ;;  %v257_v21 = vld [vmem:[%s1257_s24 + $0xf8] sm:$0xff]  ;;  %459 = vmatprep.mubr.f32.mxu1 %v197_v17  ;;  %v808_v24 = vpack.c.bf16 %v239_v12, %v238_v11 }
  0x70   : > { %v271_v19 = vld [vmem:[%s1257_s24 + $0x168] sm:$0xff]  ;;  %354 = vmatprep.mubr.f32.mxu0 %v195_v16  ;;  %v288_v22 = vld [vmem:[%s1257_s24 + $0x1f0] sm:$0xff]  ;;  %v289_v23 = vld [vmem:[%s1257_s24 + $0x1f8] sm:$0xff]  ;;  %v810_v26 = vpack.c.bf16 %v257_v21, %v256_v20 }
  0x71   : > { %801 = vmatpush3.bf16.msra.mxu0 %v800_v62  ;;  %v840_v25 = vpack.c.bf16 %v271_v19, %v270_v15  ;;  %v240_v27 = vld [vmem:[%s1257_s24 + $0x70] sm:$0xff]  ;;  %v241_v28 = vld [vmem:[%s1257_s24 + $0x78] sm:$0xff]  ;;  %v842_v29 = vpack.c.bf16 %v289_v23, %v288_v22  ;;  %v194_v34 = vld [vmem:[#allocation2] sm:$0xff] }
  0x72   : > { %833 = vmatpush3.bf16.msra.mxu1 %v832_v63  ;;  %803 = vmatprep.subr.bf16.mxu0 %v802_v0  ;;  %v272_v30 = vld [vmem:[%s1257_s24 + $0x170] sm:$0xff]  ;;  %v273_v31 = vld [vmem:[%s1257_s24 + $0x178] sm:$0xff]  ;;  %v812_v32 = vpack.c.bf16 %v241_v28, %v240_v27  ;;  %v199_v36 = vld [vmem:[#allocation2 + $0x28] sm:$0xff] }
  0x73   : > { %835 = vmatprep.subr.bf16.mxu1 %v834_v4  ;;  %v844_v33 = vpack.c.bf16 %v273_v31, %v272_v30  ;;  %v196_v35 = vld [vmem:[#allocation2 + $0x10] sm:$0xff]  ;;  %v201_v37 = vld [vmem:[#allocation2 + $0x38] sm:$0xff]  ;;  %v198_v38 = vld [vmem:[#allocation2 + $0x20] sm:$0xff] }
  0x74   : > { %v200_v39 = vld [vmem:[#allocation2 + $0x30] sm:$0xff]  ;;  %v203_v40 = vld [vmem:[#allocation2 + $0x48] sm:$0xff]  ;;  %v205_v41 = vld [vmem:[#allocation2 + $0x58] sm:$0xff] }
  0x75   : > { %805 = vmatpush3.bf16.msra.mxu0 %v804_v10  ;;  %v202_v42 = vld [vmem:[#allocation2 + $0x40] sm:$0xff]  ;;  %v204_v43 = vld [vmem:[#allocation2 + $0x50] sm:$0xff]  ;;  %v207_v44 = vld [vmem:[#allocation2 + $0x68] sm:$0xff] }
  0x76   : > { %837 = vmatpush3.bf16.msra.mxu1 %v836_v13  ;;  %807 = vmatprep.subr.bf16.mxu0 %v806_v14  ;;  %v209_v45 = vld [vmem:[#allocation2 + $0x78] sm:$0xff]  ;;  %v206_v46 = vld [vmem:[#allocation2 + $0x60] sm:$0xff]  ;;  %v208_v47 = vld [vmem:[#allocation2 + $0x70] sm:$0xff] }
  0x77   : > { %839 = vmatprep.subr.bf16.mxu1 %v838_v18  ;;  %v211_v48 = vld [vmem:[#allocation2 + $0x88] sm:$0xff]  ;;  %v213_v49 = vld [vmem:[#allocation2 + $0x98] sm:$0xff]  ;;  %v210_v50 = vld [vmem:[#allocation2 + $0x80] sm:$0xff] }
  0x78   : > { %v212_v51 = vld [vmem:[#allocation2 + $0x90] sm:$0xff]  ;;  %v215_v52 = vld [vmem:[#allocation2 + $0xa8] sm:$0xff]  ;;  %v217_v53 = vld [vmem:[#allocation2 + $0xb8] sm:$0xff] }
  0x79   : > { %809 = vmatpush3.bf16.msra.mxu0 %v808_v24  ;;  %v214_v54 = vld [vmem:[#allocation2 + $0xa0] sm:$0xff]  ;;  %v216_v55 = vld [vmem:[#allocation2 + $0xb0] sm:$0xff]  ;;  %v219_v56 = vld [vmem:[#allocation2 + $0xc8] sm:$0xff] }
  0x7a   : > { %841 = vmatpush3.bf16.msra.mxu1 %v840_v25  ;;  %811 = vmatprep.subr.bf16.mxu0 %v810_v26  ;;  %v221_v57 = vld [vmem:[#allocation2 + $0xd8] sm:$0xff]  ;;  %v218_v58 = vld [vmem:[#allocation2 + $0xc0] sm:$0xff]  ;;  %v220_v59 = vld [vmem:[#allocation2 + $0xd0] sm:$0xff] }
  0x7b   : > { %843 = vmatprep.subr.bf16.mxu1 %v842_v29  ;;  %v223_v60 = vld [vmem:[#allocation2 + $0xe8] sm:$0xff]  ;;  %v225_v61 = vld [vmem:[#allocation2 + $0xf8] sm:$0xff]  ;;  %v222_v62 = vld [vmem:[#allocation2 + $0xe0] sm:$0xff] }
  0x7c   : > { %v224_v63 = vld [vmem:[#allocation2 + $0xf0] sm:$0xff] }
  0x7d   : > { %813 = vmatpush3.bf16.msra.mxu0 %v812_v32 }
  0x7e   : > { %845 = vmatpush3.bf16.msra.mxu1 %v844_v33 }
  0x80   : > { %355 = vmatmul.mubr.f32.vlgmr.msra.gmra.mrb[0].mxu0 %v194_v34 }
  0x81   : > { %460 = vmatmul.mubr.f32.vlgmr.msra.gmra.mrb[0].mxu1 %v196_v35  ;;  %359 = vmatprep.mubr.f32.mxu0 %v199_v36 }
  0x82   : > { %464 = vmatprep.mubr.f32.mxu1 %v201_v37 }
  0x84   : > { %360 = vmatmul.mubr.f32.gmra.mrb[2].mxu0 %v198_v38 }
  0x85   : > { %465 = vmatmul.mubr.f32.gmra.mrb[2].mxu1 %v200_v39  ;;  %364 = vmatprep.mubr.f32.mxu0 %v203_v40 }
  0x86   : > { %469 = vmatprep.mubr.f32.mxu1 %v205_v41 }
  0x88   : > { %365 = vmatmul.mubr.f32.gmra.mrb[4].mxu0 %v202_v42 }
  0x89   : > { %470 = vmatmul.mubr.f32.gmra.mrb[4].mxu1 %v204_v43  ;;  %369 = vmatprep.mubr.f32.mxu0 %v207_v44 }
  0x8a   : > { %474 = vmatprep.mubr.f32.mxu1 %v209_v45 }
  0x8c   : > { %370 = vmatmul.mubr.f32.gmra.mrb[6].mxu0 %v206_v46 }
  0x8d   : > { %475 = vmatmul.mubr.f32.gmra.mrb[6].mxu1 %v208_v47  ;;  %374 = vmatprep.mubr.f32.mxu0 %v211_v48 }
  0x8e   : > { %479 = vmatprep.mubr.f32.mxu1 %v213_v49 }
  0x90   : > { %375 = vmatmul.mubr.f32.gmra.mrb[8].mxu0 %v210_v50 }
  0x91   : > { %480 = vmatmul.mubr.f32.gmra.mrb[8].mxu1 %v212_v51  ;;  %379 = vmatprep.mubr.f32.mxu0 %v215_v52 }
  0x92   : > { %484 = vmatprep.mubr.f32.mxu1 %v217_v53 }
  0x94   : > { %380 = vmatmul.mubr.f32.gmra.mrb[10].mxu0 %v214_v54 }
  0x95   : > { %485 = vmatmul.mubr.f32.gmra.mrb[10].mxu1 %v216_v55  ;;  %384 = vmatprep.mubr.f32.mxu0 %v219_v56 }
  0x96   : > { %489 = vmatprep.mubr.f32.mxu1 %v221_v57 }
  0x98   : > { %385 = vmatmul.mubr.f32.gmra.mrb[12].mxu0 %v218_v58 }
  0x99   : > { %490 = vmatmul.mubr.f32.gmra.mrb[12].mxu1 %v220_v59  ;;  %389 = vmatprep.mubr.f32.mxu0 %v223_v60 }
  0x9a   : > { %494 = vmatprep.mubr.f32.mxu1 %v225_v61 }
  0x9c   : > { %390 = vmatmul.mubr.f32.gmra.mrb[14].mxu0 %v222_v62 }
  0x9d   : > { %495 = vmatmul.mubr.f32.gmra.mrb[14].mxu1 %v224_v63 }
 0x153   : > { %v702_v0 = vpop.f32.mrb[0].mxu0 }
 0x154   : > { %v758_v1 = vpop.f32.mrb[0].mxu1  ;;  %v703_v2 = vpop.f32.mrb[1].mxu0 }
 0x155   : > { %v704_v3 = vadd.f32 %v703_v2, %v702_v0  ;;  %v759_v4 = vpop.f32.mrb[1].mxu1 }
 0x156   : > { %v760_v5 = vadd.f32 %v759_v4, %v758_v1 }
 0x157   : > { %v705_v6 = vpop.f32.mrb[2].mxu0 }
 0x158   : > { %v1327_v7 = vadd.f32 %v760_v5, %v704_v3  ;;  %v761_v8 = vpop.f32.mrb[2].mxu1  ;;  %v706_v9 = vpop.f32.mrb[3].mxu0 }
 0x159   : > { %v707_v10 = vadd.f32 %v706_v9, %v705_v6  ;;  %v762_v11 = vpop.f32.mrb[3].mxu1 }
 0x15a   : > { %v763_v12 = vadd.f32 %v762_v11, %v761_v8  ;;  %v500_v19 = vmul.f32 %v1327_v7, %v1327_v7 }
 0x15b   : > { %v708_v13 = vpop.f32.mrb[4].mxu0 }
 0x15c   : > { %v1329_v14 = vadd.f32 %v763_v12, %v707_v10  ;;  %v764_v15 = vpop.f32.mrb[4].mxu1  ;;  %v709_v16 = vpop.f32.mrb[5].mxu0 }
 0x15d   : > { %v710_v17 = vadd.f32 %v709_v16, %v708_v13  ;;  %v765_v18 = vpop.f32.mrb[5].mxu1 }
 0x15e   : > { %v501_v20 = vmul.f32 %v1329_v14, %v1329_v14  ;;  %v766_v21 = vadd.f32 %v765_v18, %v764_v15 }
 0x15f   : > { %v711_v22 = vpop.f32.mrb[6].mxu0 }
 0x160   : > { %v508_v23 = vadd.f32 %v501_v20, %v500_v19  ;;  %v1335_v24 = vadd.f32 %v766_v21, %v710_v17  ;;  %v767_v25 = vpop.f32.mrb[6].mxu1  ;;  %v712_v26 = vpop.f32.mrb[7].mxu0 }
 0x161   : > { %v713_v27 = vadd.f32 %v712_v26, %v711_v22  ;;  %v768_v28 = vpop.f32.mrb[7].mxu1 }
 0x162   : > { %v502_v29 = vmul.f32 %v1335_v24, %v1335_v24  ;;  %v769_v30 = vadd.f32 %v768_v28, %v767_v25 }
 0x163   : > { %v714_v31 = vpop.f32.mrb[8].mxu0 }
 0x164   : > { %v509_v32 = vadd.f32 %v508_v23, %v502_v29  ;;  %v477_v33 = vadd.f32 %v769_v30, %v713_v27  ;;  %v770_v34 = vpop.f32.mrb[8].mxu1  ;;  %v715_v35 = vpop.f32.mrb[9].mxu0 }
 0x165   : > { %v716_v36 = vadd.f32 %v715_v35, %v714_v31  ;;  %v771_v37 = vpop.f32.mrb[9].mxu1 }
 0x166   : > { %v503_v38 = vmul.f32 %v477_v33, %v477_v33  ;;  %v772_v39 = vadd.f32 %v771_v37, %v770_v34 }
 0x167   : > { %v717_v40 = vpop.f32.mrb[10].mxu0 }
 0x168   : > { %v510_v41 = vadd.f32 %v509_v32, %v503_v38  ;;  %v482_v42 = vadd.f32 %v772_v39, %v716_v36  ;;  %v773_v43 = vpop.f32.mrb[10].mxu1  ;;  %v718_v44 = vpop.f32.mrb[11].mxu0 }
 0x169   : > { %v719_v45 = vadd.f32 %v718_v44, %v717_v40  ;;  %v774_v46 = vpop.f32.mrb[11].mxu1 }
 0x16a   : > { %v504_v47 = vmul.f32 %v482_v42, %v482_v42  ;;  %v775_v48 = vadd.f32 %v774_v46, %v773_v43 }
 0x16b   : > { %v720_v49 = vpop.f32.mrb[12].mxu0 }
 0x16c   : > { %v511_v50 = vadd.f32 %v510_v41, %v504_v47  ;;  %v487_v51 = vadd.f32 %v775_v48, %v719_v45  ;;  %v776_v52 = vpop.f32.mrb[12].mxu1  ;;  %v721_v53 = vpop.f32.mrb[13].mxu0 }
 0x16d   : > { %v722_v54 = vadd.f32 %v721_v53, %v720_v49  ;;  %v777_v55 = vpop.f32.mrb[13].mxu1 }
 0x16e   : > { %v505_v56 = vmul.f32 %v487_v51, %v487_v51  ;;  %v778_v57 = vadd.f32 %v777_v55, %v776_v52 }
 0x16f   : > { %v723_v58 = vpop.f32.mrb[14].mxu0 }
 0x170   : > { %v512_v59 = vadd.f32 %v511_v50, %v505_v56  ;;  %v492_v60 = vadd.f32 %v778_v57, %v722_v54  ;;  %v779_v61 = vpop.f32.mrb[14].mxu1  ;;  %v724_v62 = vpop.f32.mrb[15].mxu0 }
 0x171   : > { %v725_v63 = vadd.f32 %v724_v62, %v723_v58  ;;  %v780_v0 = vpop.f32.mrb[15].mxu1 }
 0x172   : > { %v506_v1 = vmul.f32 %v492_v60, %v492_v60  ;;  %v781_v2 = vadd.f32 %v780_v0, %v779_v61 }
 0x174   : > { %v513_v3 = vadd.f32 %v512_v59, %v506_v1  ;;  %v497_v4 = vadd.f32 %v781_v2, %v725_v63 }
 0x176   : > { %v507_v5 = vmul.f32 %v497_v4, %v497_v4 }
 0x178   : > { %v514_v6 = vadd.f32 %v513_v3, %v507_v5 }
 0x17a   : > { %v515_v8 = vrot.slane %v514_v6, 4 }
 0x17c   : > { %v516_v9 = vadd.f32 %v515_v8, %v514_v6 }
 0x17e   : > { %v517_v10 = vrot.slane %v516_v9, 2 }
 0x180   : > { %v518_v11 = vadd.f32 %v517_v10, %v516_v9 }
 0x182   : > { %v519_v12 = vrot.slane %v518_v11, 1 }
 0x184   : > { %v520_v13 = vadd.f32 %v519_v12, %v518_v11 }
 0x186   : > { %v521_v15 = vmax.f32 %v520_v13, 1e-20 }
 0x188   : > { %925 = vrsqrt.f32 %v521_v15 }
 0x192   : > { %v926_v16 = vpop.eup %925 }
 0x193   : > { %v530_v17 = vmul.f32 %v926_v16, %v497_v4  ;;  %v523_v18 = vmul.f32 %v926_v16, %v1327_v7  ;;  %v524_v19 = vmul.f32 %v926_v16, %v1329_v14  ;;  %v525_v20 = vmul.f32 %v926_v16, %v1335_v24 }
 0x194   : > { %v526_v21 = vmul.f32 %v926_v16, %v477_v33  ;;  %v527_v22 = vmul.f32 %v926_v16, %v482_v42  ;;  %v528_v23 = vmul.f32 %v926_v16, %v487_v51  ;;  %v529_v25 = vmul.f32 %v926_v16, %v492_v60 }
 0x195   : > { %538 = vst [vmem:[%s193_s21 + $0x38] sm:$0xff] %v530_v17  ;;  %531 = vst [vmem:[%s193_s21] sm:$0xff] %v523_v18 }
 0x196   : > { %532 = vst [vmem:[%s193_s21 + $0x8] sm:$0xff] %v524_v19  ;;  %533 = vst [vmem:[%s193_s21 + $0x10] sm:$0xff] %v525_v20 }
 0x197   : > { %534 = vst [vmem:[%s193_s21 + $0x18] sm:$0xff] %v526_v21  ;;  %535 = vst [vmem:[%s193_s21 + $0x20] sm:$0xff] %v527_v22 }
 0x198   : > { %536 = vst [vmem:[%s193_s21 + $0x28] sm:$0xff] %v528_v23  ;;  %537 = vst [vmem:[%s193_s21 + $0x30] sm:$0xff] %v529_v25 }
 0x199   : > { %998 = shalt.err (!%p995_p5)
}
 0x19a   : > { %s999_s3 = scalar_lea.hbm %s1347_s7, 1024  ;;  %s1003_s16 = scalar_lea.hbm %s1400_s2, 2048 }
 0x19b   : > { %p1000_p9 = scmp.ne.s32.totalorder %s1347_s7, %s999_s3  ;;  %p1004_p3 = scmp.lt.u32.totalorder %s1347_s7, %s1400_s2 }
 0x19c   : > { %p1005_p7 = scmp.lt.u32.totalorder %s1003_s16, %s999_s3  ;;  %p1007_p4 = scmp.lt.u32.totalorder %s999_s3, %s1347_s7 }
 0x19d   : > { %p1001_p1 = pnand %p1000_p9, %p1193_p10 }
 0x19e   : > { %p1006_p13 = por %p1005_p7, %p1004_p3 }
 0x19f   : > { %p1002_p2 = pneg %p1001_p1 }
 0x1a0   : > { %p1008_p6 = por %p1007_p4, %p1006_p13 }
 0x1a2   : > { %p1009_p8 = pnand %p1008_p6, %p1002_p2 }
 0x1a4   : > { %1012 = shalt.err (!%p1009_p8)
}
 0x1a5   : > { %s1080_s17 = smov 128   ;;  %s1081_s19 = smov 8  }
 0x1a6   : > { %852 = dma.vmem_to_hbm [thread:$0]  (%p1193_p10), %s1349_s4, 1024, %s1347_s7, %s540_s12, %s1080_s17, %s1080_s17, %s1081_s19  }
 0x1a7 PF: > { %s569_s21 = sand.u32 1, %s1051_s9   ;;  %p1418_p12 = scmp.ne.s32.totalorder %s1408_s20, 0 }
 0x1a8   : > { %p1419_p11 = scmp.ge.s32.totalorder %s1071_s14, 2  ;;  %s570_s5 = scalar_lea.sflag [#allocation4], %s569_s21 }
 0x1aa   : > { %p863_p0 = pnand %p1419_p11, %p1418_p12 }
 0x1ac   : > { %1046 = dma.done.wait (!%p863_p0), %s570_s5, 1024  }
 0x1ad   : > { %1048 = vsyncadd (!%p863_p0), %s570_s5, 4294966272  ;;  %s19_s14 = sadd.s32 1, %s1071_s14   ;;  %s1420_s9 = smov %s1055_s10 }
 0x1ae   : > { %p16_p5 = scmp.ge.s32.totalorder %s19_s14, 4   ;;  %s1421_s10 = smov %s1059_s11 }
 0x1af   : > { %s1422_s11 = smov %s1202_s28  ;;  %s1423_s12 = smov %s1067_s13 }
 0x1b0   : > { %s1424_s13 = smov %s1426_s25  ;;  %18 = sbr.rel (!%p16_p5) target bundleno = 7 (0x7), region = 78 }
 0x1b7   :  { %575 = vsyncpa [#allocation3], 1 }
 0x1b8   :  { %577 = vsyncpa [#allocation3 + $0x1], 1 }
 0x1b9   :  { %578 = vsyncpa [#allocation6], 1 }
 0x1ba   :  { %580 = vsyncpa [#allocation6 + $0x1], 1 }
 0x1bb   :  { %581 = vsyncpa [#allocation4], 1 }
 0x1bc   :  { %583 = vsyncpa [#allocation4 + $0x1], 1 }

</bundles_post_ra>
